<compile_context>
chip_gen: v5e
topology: v5e:2x2
jax: 0.10.0
libtpu: 0.0.40
codegen_flags: <defaults>
</compile_context>

<pallas_src>
import functools

import jax
import jax.numpy as jnp
from jax import lax
from jax.experimental import pallas as pl
from jax.experimental.pallas import tpu as pltpu

KH = 3
KW = 3
STRIDE = 3                      # PyTorch default: stride = kernel_size
_TARGET_IN_BYTES = 4 << 20      # ~4 MiB of input per grid step


def _ceil_pool_out(size: int, k: int, s: int) -> int:
    """PyTorch MaxPool2d output size (ceil_mode=True, padding=0, dilation=1)."""
    out = -(-(size - k) // s) + 1
    if (out - 1) * s >= size:   # ceil_mode window must start inside the input
        out -= 1
    return max(out, 0)


def _num_tensorcores() -> int:
    """Best-effort TensorCore count (v7x has 2 per chip); safe fallback = 1."""
    try:
        info = pltpu.get_tpu_info()
    except Exception:
        return 1
    for attr in ("num_tensorcores", "tensorcores_per_chip", "num_cores",
                 "core_count"):
        val = getattr(info, attr, None)
        if isinstance(val, int) and val >= 1:
            return val
    return 1


def _plan(H, W, Ho, NC, itemsize):
    """Pick (rows-per-step R, n_row, lane block NCb, n_nc)."""
    # Lane (merged N*C) blocking: full N*C when a one-output-row step fits the
    # target, otherwise a balanced multiple of 128 (lane-dense, unmasked vst).
    if NC <= 128 or KH * W * NC * itemsize <= _TARGET_IN_BYTES:
        ncb = NC
    else:
        ncb = max(128, (_TARGET_IN_BYTES // (KH * W * itemsize)) // 128 * 128)
        ncb = min(ncb, NC)
        n_nc = pl.cdiv(NC, ncb)
        ncb = min(NC, 128 * pl.cdiv(NC, 128 * n_nc))   # balance the last block
    n_nc = pl.cdiv(NC, ncb)

    # Output rows per step: amortize per-step overhead, keep the input block a
    # ~4 MiB band, and keep R*KH <= H so only the *last* block is partial.
    row_bytes = KH * W * ncb * itemsize
    r = max(1, _TARGET_IN_BYTES // row_bytes)
    if H >= KH:
        r = min(r, H // KH)
    r = max(1, min(r, Ho))
    n_row = pl.cdiv(Ho, r)
    # Keep both TensorCores busy -- but only on chips that actually have two.
    if n_row * n_nc < 2 and Ho > 1 and _num_tensorcores() >= 2:
        n_row = 2
    r = pl.cdiv(Ho, n_row)
    n_row = pl.cdiv(Ho, r)
    return r, n_row, ncb, n_nc


def _maxpool_kernel(x_ref, o_ref, *, H, W, Ho, Wo, R, n_row, w_tail, h_tail):
    # x_ref: (R*KH, W,  NCb) -- input rows feeding this block of output rows
    # o_ref: (R,    Wo, NCb)
    # Layout: W / Wo on sublanes, merged N*C on lanes.
    rkh = R * KH

    def kw_pieces(row_start, nrows):
        """KW-reduced slabs as [(col0, width, (nrows, width, NCb) value)].

        Stride-KW sublane slices are read straight from x_ref (no scratch).
        The ragged last window (ceil_mode along W) only loads its in-bounds
        taps, so no read ever indexes past W (VMEM refs have no bounds check).
        """
        rows = pl.ds(row_start, nrows)
        pieces = []
        wm = Wo - 1 if w_tail else Wo      # windows whose KW taps are all valid
        if wm > 0:
            t = x_ref[rows, pl.ds(0, wm, stride=KW), :]
            t = jnp.maximum(t, x_ref[rows, pl.ds(1, wm, stride=KW), :])
            t = jnp.maximum(t, x_ref[rows, pl.ds(2, wm, stride=KW), :])
            pieces.append((0, wm, t))
        if w_tail:                          # last window: 1..2 valid taps
            base = KW * (Wo - 1)
            t = x_ref[rows, pl.ds(base, 1), :]
            for j in range(1, W - base):
                t = jnp.maximum(t, x_ref[rows, pl.ds(base + j, 1), :])
            pieces.append((Wo - 1, 1, t))
        return pieces

    # Main pass: KW reduce (strided sublane loads + VPU maxes), then KH reduce
    # over a leading (non-layout) axis -- pure VPU, no relayout, no scratch.
    for col0, width, t in kw_pieces(0, rkh):
        red = jnp.max(t.reshape(R, KH, width, t.shape[-1]), axis=1)
        o_ref[:, pl.ds(col0, width), :] = red

    # ceil_mode along H: only the last valid output row's window sticks past H,
    # so only that row may have picked up out-of-range (garbage) rows above.
    # Recompute it from the in-bounds rows only; runs only on the last block.
    if h_tail:
        @pl.when(pl.program_id(0) == n_row - 1)
        def _fix_last_row():
            r_loc = (Ho - 1) - (n_row - 1) * R      # static local row index
            n_valid = H - KH * (Ho - 1)             # 1 or 2 in-bounds KH taps
            for col0, width, t in kw_pieces(r_loc * KH, n_valid):
                fix = jnp.max(t, axis=0, keepdims=True)
                o_ref[pl.ds(r_loc, 1), pl.ds(col0, width), :] = fix


def maxpool2d_ceil(x_nchw):
    """torch.nn.MaxPool2d(kernel_size=3, ceil_mode=True) forward, NCHW in/out."""
    N, C, H, W = x_nchw.shape
    dtype = x_nchw.dtype
    itemsize = jnp.dtype(dtype).itemsize
    Ho = _ceil_pool_out(H, KH, STRIDE)
    Wo = _ceil_pool_out(W, KW, STRIDE)
    NC = N * C

    R, n_row, NCb, n_nc = _plan(H, W, Ho, NC, itemsize)
    w_tail = Wo * KW > W        # ceil_mode padding along W
    h_tail = Ho * KH > H        # ceil_mode padding along H

    # Only remaining glue: the module is NCHW but the pool runs on an
    # (H, W, N*C) view (merged batch*channel on lanes).  In a channels-last
    # pipeline both layout passes disappear.
    # TODO(synk): an NCHW-native variant (W on lanes) would drop these two XLA
    # transposes but needs lane-strided access / in-kernel minor transposes.
    x_lay = jnp.transpose(x_nchw, (2, 3, 0, 1)).reshape(H, W, NC)

    # Explicit VMEM budgeting only for corner cases (huge W with tiny N*C)
    # where even a one-output-row step exceeds the ~4 MiB target.
    in_bytes = R * KH * W * NCb * itemsize
    out_bytes = R * Wo * NCb * itemsize
    vmem_limit = None
    if 2 * (in_bytes + out_bytes) > (12 << 20):
        vmem_limit = int(min(3 * (in_bytes + out_bytes) + (2 << 20), 48 << 20))

    kernel = functools.partial(
        _maxpool_kernel, H=H, W=W, Ho=Ho, Wo=Wo, R=R, n_row=n_row,
        w_tail=w_tail, h_tail=h_tail)

    out_lay = pl.pallas_call(
        kernel,
        out_shape=jax.ShapeDtypeStruct((Ho, Wo, NC), dtype),
        grid=(n_row, n_nc),
        in_specs=[pl.BlockSpec((R * KH, W, NCb), lambda i, c: (i, 0, c))],
        out_specs=pl.BlockSpec((R, Wo, NCb), lambda i, c: (i, 0, c)),
        compiler_params=pltpu.CompilerParams(
            dimension_semantics=("parallel", "parallel"),
            vmem_limit_bytes=vmem_limit),
    )(x_lay)

    return jnp.transpose(out_lay.reshape(Ho, Wo, N, C), (2, 3, 0, 1))


if __name__ == "__main__":
    key = jax.random.PRNGKey(0)
    x = jax.random.normal(key, (2, 4, 16, 16), dtype=jnp.float32)

    fn = jax.jit(maxpool2d_ceil)
    out = jax.block_until_ready(fn(x))

    # Pure-JAX reference (ceil_mode == -inf right/bottom edge padding).
    N, C, H, W = x.shape
    Ho = _ceil_pool_out(H, KH, STRIDE)
    Wo = _ceil_pool_out(W, KW, STRIDE)
    pad_h = max(0, (Ho - 1) * STRIDE + KH - H)
    pad_w = max(0, (Wo - 1) * STRIDE + KW - W)
    ref = lax.reduce_window(
        x, -jnp.inf, lax.max,
        window_dimensions=(1, 1, KH, KW),
        window_strides=(1, 1, STRIDE, STRIDE),
        padding=((0, 0), (0, 0), (0, pad_h), (0, pad_w)))

    assert out.shape == (N, C, Ho, Wo), out.shape
    assert jnp.allclose(out, ref), "Pallas maxpool mismatch vs reference"
    print("KERNEL_OK")
</pallas_src>

<mosaic_0001>
module attributes {stable_mosaic.version = 11 : i64} {
  func.func @_maxpool_kernel(%arg0: i32, %arg1: i32, %arg2: memref<9x16x8xf32, #tpu.memory_space<vmem>>, %arg3: memref<3x6x8xf32, #tpu.memory_space<vmem>>) attributes {dimension_semantics = [#tpu.dimension_semantics<parallel>, #tpu.dimension_semantics<parallel>], iteration_bounds = array<i64: 2, 1>, scalar_prefetch = 0 : i64, scratch_operands = 0 : i64, tpu.core_type = #tpu.core_type<tc>, window_params = [{transform_indices = @transform_0, window_bounds = array<i64: 9, 16, 8>}, {transform_indices = @transform_1, window_bounds = array<i64: 3, 6, 8>}]} {
    %c0 = arith.constant 0 : index
    %c0_0 = arith.constant 0 : index
    %c0_1 = arith.constant 0 : index
    %0 = tpu.strided_load %arg2[%c0, %c0_0, %c0_1] {strides = array<i32: 1, 3, 1>} : memref<9x16x8xf32, #tpu.memory_space<vmem>>, vector<9x5x8xf32>
    %c0_2 = arith.constant 0 : index
    %c1 = arith.constant 1 : index
    %c0_3 = arith.constant 0 : index
    %1 = tpu.strided_load %arg2[%c0_2, %c1, %c0_3] {strides = array<i32: 1, 3, 1>} : memref<9x16x8xf32, #tpu.memory_space<vmem>>, vector<9x5x8xf32>
    %2 = arith.maximumf %0, %1 : vector<9x5x8xf32>
    %c0_4 = arith.constant 0 : index
    %c2 = arith.constant 2 : index
    %c0_5 = arith.constant 0 : index
    %3 = tpu.strided_load %arg2[%c0_4, %c2, %c0_5] {strides = array<i32: 1, 3, 1>} : memref<9x16x8xf32, #tpu.memory_space<vmem>>, vector<9x5x8xf32>
    %4 = arith.maximumf %2, %3 : vector<9x5x8xf32>
    %c0_6 = arith.constant 0 : index
    %c15 = arith.constant 15 : index
    %c0_7 = arith.constant 0 : index
    %5 = vector.load %arg2[%c0_6, %c15, %c0_7] : memref<9x16x8xf32, #tpu.memory_space<vmem>>, vector<9x1x8xf32>
    %6 = vector.shape_cast %4 : vector<9x5x8xf32> to vector<3x3x5x8xf32>
    %cst = arith.constant dense<0xFF800000> : vector<3x5x8xf32>
    %7 = vector.multi_reduction <maximumf>, %6, %cst [1] : vector<3x3x5x8xf32> to vector<3x5x8xf32>
    %c0_8 = arith.constant 0 : index
    %c0_9 = arith.constant 0 : index
    %c0_10 = arith.constant 0 : index
    %8 = vector.load %arg3[%c0_8, %c0_9, %c0_10] : memref<3x6x8xf32, #tpu.memory_space<vmem>>, vector<3x5x8xf32>
    tpu.vector_store %arg3[%c0_8, %c0_9, %c0_10], %7 {strides = array<i32>} : memref<3x6x8xf32, #tpu.memory_space<vmem>>, vector<3x5x8xf32>,
    %9 = vector.shape_cast %5 : vector<9x1x8xf32> to vector<3x3x1x8xf32>
    %cst_11 = arith.constant dense<0xFF800000> : vector<3x1x8xf32>
    %10 = vector.multi_reduction <maximumf>, %9, %cst_11 [1] : vector<3x3x1x8xf32> to vector<3x1x8xf32>
    %c0_12 = arith.constant 0 : index
    %c5 = arith.constant 5 : index
    %c0_13 = arith.constant 0 : index
    %11 = vector.load %arg3[%c0_12, %c5, %c0_13] : memref<3x6x8xf32, #tpu.memory_space<vmem>>, vector<3x1x8xf32>
    tpu.vector_store %arg3[%c0_12, %c5, %c0_13], %10 {strides = array<i32>} : memref<3x6x8xf32, #tpu.memory_space<vmem>>, vector<3x1x8xf32>,
    %c1_i32 = arith.constant 1 : i32
    %12 = arith.cmpi eq, %arg0, %c1_i32 : i32
    %13 = arith.extui %12 : i1 to i32
    %c0_i32 = arith.constant 0 : i32
    %14 = arith.cmpi ne, %13, %c0_i32 : i32
    scf.if %14 {
      %c6 = arith.constant 6 : index
      %c0_14 = arith.constant 0 : index
      %c0_15 = arith.constant 0 : index
      %15 = tpu.strided_load %arg2[%c6, %c0_14, %c0_15] {strides = array<i32: 1, 3, 1>} : memref<9x16x8xf32, #tpu.memory_space<vmem>>, vector<1x5x8xf32>
      %c6_16 = arith.constant 6 : index
      %c1_17 = arith.constant 1 : index
      %c0_18 = arith.constant 0 : index
      %16 = tpu.strided_load %arg2[%c6_16, %c1_17, %c0_18] {strides = array<i32: 1, 3, 1>} : memref<9x16x8xf32, #tpu.memory_space<vmem>>, vector<1x5x8xf32>
      %17 = arith.maximumf %15, %16 : vector<1x5x8xf32>
      %c6_19 = arith.constant 6 : index
      %c2_20 = arith.constant 2 : index
      %c0_21 = arith.constant 0 : index
      %18 = tpu.strided_load %arg2[%c6_19, %c2_20, %c0_21] {strides = array<i32: 1, 3, 1>} : memref<9x16x8xf32, #tpu.memory_space<vmem>>, vector<1x5x8xf32>
      %19 = arith.maximumf %17, %18 : vector<1x5x8xf32>
      %c6_22 = arith.constant 6 : index
      %c15_23 = arith.constant 15 : index
      %c0_24 = arith.constant 0 : index
      %20 = vector.load %arg2[%c6_22, %c15_23, %c0_24] : memref<9x16x8xf32, #tpu.memory_space<vmem>>, vector<1x1x8xf32>
      %cst_25 = arith.constant dense<0xFF800000> : vector<5x8xf32>
      %21 = vector.multi_reduction <maximumf>, %19, %cst_25 [0] : vector<1x5x8xf32> to vector<5x8xf32>
      %22 = vector.shape_cast %21 : vector<5x8xf32> to vector<1x5x8xf32>
      %c2_26 = arith.constant 2 : index
      %c0_27 = arith.constant 0 : index
      %c0_28 = arith.constant 0 : index
      %23 = vector.load %arg3[%c2_26, %c0_27, %c0_28] : memref<3x6x8xf32, #tpu.memory_space<vmem>>, vector<1x5x8xf32>
      tpu.vector_store %arg3[%c2_26, %c0_27, %c0_28], %22 {strides = array<i32>} : memref<3x6x8xf32, #tpu.memory_space<vmem>>, vector<1x5x8xf32>,
      %cst_29 = arith.constant dense<0xFF800000> : vector<1x8xf32>
      %24 = vector.multi_reduction <maximumf>, %20, %cst_29 [0] : vector<1x1x8xf32> to vector<1x8xf32>
      %25 = vector.shape_cast %24 : vector<1x8xf32> to vector<1x1x8xf32>
      %c2_30 = arith.constant 2 : index
      %c5_31 = arith.constant 5 : index
      %c0_32 = arith.constant 0 : index
      %26 = vector.load %arg3[%c2_30, %c5_31, %c0_32] : memref<3x6x8xf32, #tpu.memory_space<vmem>>, vector<1x1x8xf32>
      tpu.vector_store %arg3[%c2_30, %c5_31, %c0_32], %25 {strides = array<i32>} : memref<3x6x8xf32, #tpu.memory_space<vmem>>, vector<1x1x8xf32>,
    } else {
    }
    return
  }
  func.func @transform_0(%arg0: i32, %arg1: i32) -> (i32, i32, i32) {
    %c0_i32 = arith.constant 0 : i32
    %c0_i32_0 = arith.constant 0 : i32
    return %arg0, %c0_i32, %arg1 : i32, i32, i32
  }
  func.func @transform_1(%arg0: i32, %arg1: i32) -> (i32, i32, i32) {
    %c0_i32 = arith.constant 0 : i32
    %c0_i32_0 = arith.constant 0 : i32
    return %arg0, %c0_i32, %arg1 : i32, i32, i32
  }
}

</mosaic_0001>

<bundles_post_ra>
// kernel: maxpool2d_ceil.1
= control target key start
LH: loop header
LB: loop body
LE: loop exit
PB: predicated region body
PF: predicated region fallthrough
CT: control target
= control target key end

     0   :  { %s498_s6 = smov 0   ;;  %s500_s7 = smov 0   ;;  %s617_s0 = inlined_call_operand.vmem [shape: f32[16,16,8], index: 0, kind: input, shape index: {}]   ;;  %s618_s1 = inlined_call_operand.vmem [shape: f32[6,6,8], index: 1, kind: output, shape index: {}]  }
   0x1   :  { %s502_s8 = smov 0  }
   0x2 LB: > { %s23_s9 = sadd.s32 1, %s482_s7  ;;  %p400_p0 = scmp.ge.s32.totalorder %s486_s8, 1  ;;  %s486_s8 = sphi %s502_s8, %s11_s8   ;;  %s482_s7 = sphi %s500_s7, %s620_s7   ;;  %s478_s6 = sphi %s498_s6, %s619_s6  }
   0x3   : > { %p25_p1 = scmp.ge.s32.totalorder %s23_s9, 2  ;;  %p118_p2 = scmp.lt.s32.totalorder %s486_s8, 3 }
   0x5   : > { %s622_s9 = smov (%p25_p1, %s23_s9), 0  ;;  %p119_p3 = pnand %p400_p0, %p118_p2 }
   0x6   : > { %s150_s10 = smul.u32 (!%p119_p3), 9, %s478_s6  ;;  %p430_p6 = scmp.ne.s32.totalorder (!%p119_p3), %s478_s6, 1 }
   0x7   : > { %122 = sbr.rel (%p119_p3) target bundleno = 49 (0x31), region = 24 }
   0x8   : > { %s170_s11 = smul.u32 (!%p119_p3), 3, %s478_s6  ;;  %p156_p4 = scmp.lt.s32.totalorder (!%p119_p3), %s150_s10, 15 }
   0xa   : > { %p171_p5 = scmp.lt.s32.totalorder (!%p119_p3), %s170_s11, 5 }
   0xc   : > { %s624_s10 = smov (!%p156_p4, %s150_s10), 15  ;;  %s626_s11 = smov (!%p171_p5, %s170_s11), 5  ;;  %vm259_vm0 = vcmask 61440   ;;  %vm278_vm1 = vcmask 57344  }
   0xd   : > { %s439_s12 = sshll.u32 %s624_s10, 4  ;;  %s403_s16 = sshll.u32 %s626_s11, 3 }
   0xe   : > { %s525_s15 = scalar_lea.vmem %s617_s0, %s439_s12  ;;  %s551_s19 = scalar_lea.vmem %s618_s1, %s403_s16 }
   0xf   : > { %v179_v0 = vld [vmem:[%s525_s15] ss:$3 sm:$0x1f]  ;;  %v404_v1 = vld [vmem:[%s525_s15 + $0x10] ss:$3 sm:$0x1f] }
  0x10   : > { %v405_v2 = vld [vmem:[%s525_s15 + $0x20] ss:$3 sm:$0x1f]  ;;  %v412_v3 = vld [vmem:[%s525_s15 + $0x1] ss:$3 sm:$0x1f] }
  0x11   : > { %v413_v4 = vld [vmem:[%s525_s15 + $0x11] ss:$3 sm:$0x1f]  ;;  %v414_v5 = vld [vmem:[%s525_s15 + $0x21] ss:$3 sm:$0x1f]  ;;  %v214_v6 = vmax.f32 %v179_v0, %v412_v3 }
  0x12   : > { %v215_v7 = vmax.f32 %v404_v1, %v413_v4  ;;  %v216_v8 = vmax.f32 %v405_v2, %v414_v5  ;;  %v421_v9 = vld [vmem:[%s525_s15 + $0x2] ss:$3 sm:$0x1f]  ;;  %v422_v10 = vld [vmem:[%s525_s15 + $0x12] ss:$3 sm:$0x1f] }
  0x13   : > { %v423_v11 = vld [vmem:[%s525_s15 + $0x22] ss:$3 sm:$0x1f]  ;;  %v241_v12 = vmax.f32 %v214_v6, %v421_v9  ;;  %v250_v13 = vld [vmem:[%s525_s15 + $0xf] sm:$0x1] }
  0x14   : > { %v242_v14 = vmax.f32 %v215_v7, %v422_v10  ;;  %v243_v15 = vmax.f32 %v216_v8, %v423_v11  ;;  %v251_v16 = vld [vmem:[%s525_s15 + $0x1f] sm:$0x1]  ;;  %v252_v17 = vld [vmem:[%s525_s15 + $0x2f] sm:$0x1]  ;;  %v279_v18 = vsel %vm278_vm1, %v250_v13, -inf }
  0x15   : > { %v260_v19 = vsel %vm259_vm0, %v241_v12, -inf  ;;  %v280_v20 = vsel %vm278_vm1, %v251_v16, -inf  ;;  %v281_v21 = vsel %vm278_vm1, %v252_v17, -inf  ;;  %v406_v22 = vld [vmem:[%s525_s15 + $0x30] ss:$3 sm:$0x1f] }
  0x16   : > { %v261_v23 = vsel %vm259_vm0, %v242_v14, -inf  ;;  %v262_v24 = vsel %vm259_vm0, %v243_v15, -inf  ;;  %v282_v25 = vmax.f32 %v279_v18, %v281_v21  ;;  %v407_v26 = vld [vmem:[%s525_s15 + $0x40] ss:$3 sm:$0x1f] }
  0x17   : > { %v263_v27 = vmax.f32 %v260_v19, %v262_v24  ;;  %v408_v28 = vld [vmem:[%s525_s15 + $0x50] ss:$3 sm:$0x1f]  ;;  %v415_v29 = vld [vmem:[%s525_s15 + $0x31] ss:$3 sm:$0x1f] }
  0x18   : > { %v283_v30 = vmax.f32 %v282_v25, %v280_v20  ;;  %v416_v31 = vld [vmem:[%s525_s15 + $0x41] ss:$3 sm:$0x1f]  ;;  %v417_v32 = vld [vmem:[%s525_s15 + $0x51] ss:$3 sm:$0x1f]  ;;  %v217_v33 = vmax.f32 %v406_v22, %v415_v29 }
  0x19   : > { %v264_v34 = vmax.f32 %v263_v27, %v261_v23  ;;  %v218_v35 = vmax.f32 %v407_v26, %v416_v31  ;;  %v219_v36 = vmax.f32 %v408_v28, %v417_v32  ;;  %v424_v37 = vld [vmem:[%s525_s15 + $0x32] ss:$3 sm:$0x1f]  ;;  %v425_v38 = vld [vmem:[%s525_s15 + $0x42] ss:$3 sm:$0x1f] }
  0x1a   : > { %294 = vst.msk [vmem:[%s551_s19 + $0x5] sm:$0x1] %vm278_vm1, %v283_v30  ;;  %v426_v39 = vld [vmem:[%s525_s15 + $0x52] ss:$3 sm:$0x1f]  ;;  %v244_v40 = vmax.f32 %v217_v33, %v424_v37 }
  0x1b   : > { %275 = vst.msk [vmem:[%s551_s19] sm:$0x1f] %vm259_vm0, %v264_v34  ;;  %v245_v41 = vmax.f32 %v218_v35, %v425_v38  ;;  %v246_v42 = vmax.f32 %v219_v36, %v426_v39  ;;  %v253_v43 = vld [vmem:[%s525_s15 + $0x3f] sm:$0x1]  ;;  %v254_v44 = vld [vmem:[%s525_s15 + $0x4f] sm:$0x1] }
  0x1c   : > { %v265_v45 = vsel %vm259_vm0, %v244_v40, -inf  ;;  %v255_v46 = vld [vmem:[%s525_s15 + $0x5f] sm:$0x1]  ;;  %v284_v47 = vsel %vm278_vm1, %v253_v43, -inf  ;;  %v285_v48 = vsel %vm278_vm1, %v254_v44, -inf }
  0x1d   : > { %v266_v49 = vsel %vm259_vm0, %v245_v41, -inf  ;;  %v267_v50 = vsel %vm259_vm0, %v246_v42, -inf  ;;  %v286_v51 = vsel %vm278_vm1, %v255_v46, -inf  ;;  %v409_v52 = vld [vmem:[%s525_s15 + $0x60] ss:$3 sm:$0x1f] }
  0x1e   : > { %v268_v53 = vmax.f32 %v265_v45, %v267_v50  ;;  %v287_v54 = vmax.f32 %v284_v47, %v286_v51  ;;  %v410_v55 = vld [vmem:[%s525_s15 + $0x70] ss:$3 sm:$0x1f]  ;;  %v411_v56 = vld [vmem:[%s525_s15 + $0x80] ss:$3 sm:$0x1f] }
  0x1f   : > { %v418_v57 = vld [vmem:[%s525_s15 + $0x61] ss:$3 sm:$0x1f]  ;;  %v419_v58 = vld [vmem:[%s525_s15 + $0x71] ss:$3 sm:$0x1f] }
  0x20   : > { %v269_v59 = vmax.f32 %v268_v53, %v266_v49  ;;  %v288_v60 = vmax.f32 %v287_v54, %v285_v48  ;;  %v420_v61 = vld [vmem:[%s525_s15 + $0x81] ss:$3 sm:$0x1f]  ;;  %v220_v62 = vmax.f32 %v409_v52, %v418_v57  ;;  %v221_v63 = vmax.f32 %v410_v55, %v419_v58  ;;  %v427_v0 = vld [vmem:[%s525_s15 + $0x62] ss:$3 sm:$0x1f] }
  0x21   : > { %v222_v1 = vmax.f32 %v411_v56, %v420_v61  ;;  %v428_v2 = vld [vmem:[%s525_s15 + $0x72] ss:$3 sm:$0x1f]  ;;  %v429_v3 = vld [vmem:[%s525_s15 + $0x82] ss:$3 sm:$0x1f] }
  0x22   : > { %276 = vst.msk [vmem:[%s551_s19 + $0x8] sm:$0x1f] %vm259_vm0, %v269_v59  ;;  %v247_v4 = vmax.f32 %v220_v62, %v427_v0  ;;  %v248_v5 = vmax.f32 %v221_v63, %v428_v2  ;;  %v256_v6 = vld [vmem:[%s525_s15 + $0x6f] sm:$0x1]  ;;  %v257_v7 = vld [vmem:[%s525_s15 + $0x7f] sm:$0x1] }
  0x23   : > { %295 = vst.msk [vmem:[%s551_s19 + $0xd] sm:$0x1] %vm278_vm1, %v288_v60  ;;  %v249_v8 = vmax.f32 %v222_v1, %v429_v3  ;;  %v258_v9 = vld [vmem:[%s525_s15 + $0x8f] sm:$0x1]  ;;  %v289_v10 = vsel %vm278_vm1, %v256_v6, -inf  ;;  %v290_v12 = vsel %vm278_vm1, %v257_v7, -inf }
  0x24   : > { %v270_v11 = vsel %vm259_vm0, %v247_v4, -inf  ;;  %v291_v13 = vsel %vm278_vm1, %v258_v9, -inf  ;;  %v271_v14 = vsel %vm259_vm0, %v248_v5, -inf }
  0x25   : > { %v272_v15 = vsel %vm259_vm0, %v249_v8, -inf  ;;  %v292_v16 = vmax.f32 %v289_v10, %v291_v13 }
  0x26   : > { %v273_v17 = vmax.f32 %v270_v11, %v272_v15  ;;  %300 = sbr.rel (%p430_p6) target bundleno = 49 (0x31), region = 28 }
  0x27   : > { %v293_v18 = vmax.f32 %v292_v16, %v290_v12 }
  0x28   : > { %v274_v19 = vmax.f32 %v273_v17, %v271_v14 }
  0x29   : > { %296 = vst.msk [vmem:[%s551_s19 + $0x15] sm:$0x1] %vm278_vm1, %v293_v18 }
  0x2a   : > { %277 = vst.msk [vmem:[%s551_s19 + $0x10] sm:$0x1f] %vm259_vm0, %v274_v19 }
  0x2b   : > { %v431_v20 = vld [vmem:[%s525_s15 + $0x60] ss:$3 sm:$0x1f]  ;;  %v432_v21 = vld [vmem:[%s525_s15 + $0x61] ss:$3 sm:$0x1f] }
  0x2c   : > { %v305_v22 = vmax.f32 %v431_v20, %v432_v21  ;;  %v433_v23 = vld [vmem:[%s525_s15 + $0x62] ss:$3 sm:$0x1f]  ;;  %v434_v24 = vld [vmem:[%s525_s15 + $0x6f] sm:$0x1] }
  0x2d   : > { %436 = vst.msk [vmem:[%s551_s19 + $0x15] sm:$0x1] %vm278_vm1, %v434_v24 }
  0x2e   : > { %v308_v25 = vmax.f32 %v305_v22, %v433_v23 }
  0x30   : > { %435 = vst.msk [vmem:[%s551_s19 + $0x10] sm:$0x1f] %vm259_vm0, %v308_v25 }
  0x31 PF: > { %s11_s8 = sadd.s32 1, %s486_s8   ;;  %s619_s6 = smov %s482_s7 }
  0x32   : > { %p8_p7 = scmp.ge.s32.totalorder %s11_s8, 4   ;;  %s620_s7 = smov %s622_s9 }
  0x34   :  { %10 = sbr.rel (!%p8_p7) target bundleno = 2 (0x2), region = 88 }

</bundles_post_ra>
